<compile_context>
chip_gen: v7x
topology: tpu7x:2x2x1
jax: 0.10.0
libtpu: 0.0.40
codegen_flags: <defaults>
</compile_context>

<pallas_src>
import jax
import jax.numpy as jnp
from jax.experimental import pallas as pl
from jax.experimental.pallas import tpu as pltpu

# ---- model hyperparameters (mirrors structure.* in the PyTorch module) ----
NUM_INPUTS = 32
HID = (64, 64)          # num_hid_nodes for num_hid_layers = 2
OUT_DIM = 1
TILE_B = 256            # batch tile on the lane axis (multiple of 128)


def tkenn_kernel(xt_ref, w1_ref, b1_ref, w2_ref, b2_ref, w3_ref, b3_ref, o_ref):
    """Fused MLP forward for one batch tile, batch-on-lanes layout.

    xt_ref : (NUM_INPUTS, TILE_B)  compute dtype (f32 or bf16)
    w1_ref : (HID0, NUM_INPUTS)    compute dtype    b1_ref : (HID0, 1) f32
    w2_ref : (HID1, HID0)          compute dtype    b2_ref : (HID1, 1) f32
    w3_ref : (HID1, 1) f32                          b3_ref : (1, 1)    f32
    o_ref  : (1, TILE_B) f32
    """
    xt = xt_ref[...]

    # layer 1: (H0, F) @ (F, B) -> (H0, B), f32 accumulation, f32 tanh
    z1 = jnp.dot(w1_ref[...], xt, preferred_element_type=jnp.float32) + b1_ref[...]
    h1 = jnp.tanh(z1)

    # layer 2: (H1, H0) @ (H0, B) -> (H1, B)
    z2 = jnp.dot(w2_ref[...], h1.astype(w2_ref.dtype),
                 preferred_element_type=jnp.float32) + b2_ref[...]
    h2 = jnp.tanh(z2)

    # output layer (N=1): VPU multiply + sublane-axis reduction, no MXU drain
    y = jnp.sum(h2 * w3_ref[...], axis=0, keepdims=True) + b3_ref[...]
    o_ref[...] = y.astype(o_ref.dtype)


def tkenn_forward(x, params, *, tile_b=TILE_B, compute_dtype=jnp.float32):
    """x: (B, NUM_INPUTS) float32 -> (B, 1) float32. One fused pallas_call."""
    w1, b1, w2, b2, w3, b3 = params
    B, F = x.shape
    assert F == NUM_INPUTS

    # Pad batch up to a tile multiple and move batch onto the lane axis.
    b_pad = ((B + tile_b - 1) // tile_b) * tile_b
    xt = jnp.zeros((F, b_pad), jnp.float32).at[:, :B].set(x.T)
    xt = xt.astype(compute_dtype)

    # Weights transposed to (out, in) so the kernel computes W @ x^T; biases
    # and the final weight column are (out, 1) and stay f32 (VPU path).
    w1t = w1.T.astype(compute_dtype)                  # (HID0, NUM_INPUTS)
    w2t = w2.T.astype(compute_dtype)                  # (HID1, HID0)
    b1c = b1.reshape(HID[0], 1).astype(jnp.float32)
    b2c = b2.reshape(HID[1], 1).astype(jnp.float32)
    w3c = w3.reshape(HID[1], 1).astype(jnp.float32)
    b3c = b3.reshape(1, 1).astype(jnp.float32)

    grid = (b_pad // tile_b,)

    def vmem_resident():
        # whole array resident in VMEM, no per-step pipelining / double buffer
        return pl.BlockSpec(memory_space=pltpu.MemorySpace.VMEM)

    yt = pl.pallas_call(
        tkenn_kernel,
        out_shape=jax.ShapeDtypeStruct((OUT_DIM, b_pad), jnp.float32),
        grid_spec=pltpu.PrefetchScalarGridSpec(
            num_scalar_prefetch=0,
            grid=grid,
            in_specs=[
                pl.BlockSpec((NUM_INPUTS, tile_b), lambda i: (0, i)),  # x^T stream
                vmem_resident(),  # W1^T
                vmem_resident(),  # b1
                vmem_resident(),  # W2^T
                vmem_resident(),  # b2
                vmem_resident(),  # w3
                vmem_resident(),  # b3
            ],
            out_specs=pl.BlockSpec((OUT_DIM, tile_b), lambda i: (0, i)),
        ),
        compiler_params=pltpu.CompilerParams(
            dimension_semantics=("parallel",),
        ),
    )(xt, w1t, b1c, w2t, b2c, w3c, b3c)

    return yt[:, :B].T  # (B, 1)


def init_params(key):
    """Mirrors init_w_and_b: xavier_uniform weights, bias filled with 0.01.

    Weights stored as (in, out), i.e. already transposed vs. torch.nn.Linear.
    """
    def xavier_uniform(k, fan_in, fan_out):
        limit = jnp.sqrt(6.0 / (fan_in + fan_out))
        return jax.random.uniform(
            k, (fan_in, fan_out), jnp.float32, minval=-limit, maxval=limit
        )

    k1, k2, k3 = jax.random.split(key, 3)
    w1 = xavier_uniform(k1, NUM_INPUTS, HID[0])
    b1 = jnp.full((1, HID[0]), 0.01, jnp.float32)
    w2 = xavier_uniform(k2, HID[0], HID[1])
    b2 = jnp.full((1, HID[1]), 0.01, jnp.float32)
    w3 = xavier_uniform(k3, HID[1], OUT_DIM)
    b3 = jnp.full((1, OUT_DIM), 0.01, jnp.float32)
    return (w1, b1, w2, b2, w3, b3)


def reference_forward(x, params):
    """Pure-JAX reference of the same MLP (correctness check)."""
    w1, b1, w2, b2, w3, b3 = params
    h1 = jnp.tanh(x @ w1 + b1)
    h2 = jnp.tanh(h1 @ w2 + b2)
    return h2 @ w3 + b3


if __name__ == "__main__":
    key = jax.random.PRNGKey(0)
    kx, kp = jax.random.split(key)

    BATCH = 512
    x = jax.random.normal(kx, (BATCH, NUM_INPUTS), jnp.float32)
    params = init_params(kp)

    y_ref = reference_forward(x, params)

    # f32 path (tight tolerance)
    y = jax.block_until_ready(tkenn_forward(x, params))
    assert y.shape == (BATCH, OUT_DIM)
    assert jnp.allclose(y, y_ref, atol=1e-5, rtol=1e-5)

    # bf16 matmul-operand path (v6e / v7x fast path; f32 tanh + accumulation)
    y_bf16 = jax.block_until_ready(
        tkenn_forward(x, params, compute_dtype=jnp.bfloat16)
    )
    assert jnp.allclose(y_bf16, y_ref, atol=5e-2, rtol=5e-2)

    # non-tile-multiple batch exercises the padding path
    y_small = jax.block_until_ready(tkenn_forward(x[:16], params))
    assert jnp.allclose(y_small, y_ref[:16], atol=1e-5, rtol=1e-5)

    print("KERNEL_OK")
</pallas_src>

<mosaic_0001>
module attributes {stable_mosaic.version = 11 : i64} {
  func.func @tkenn_kernel(%arg0: i32, %arg1: memref<32x256xf32, #tpu.memory_space<vmem>>, %arg2: memref<64x32xf32, #tpu.memory_space<vmem>>, %arg3: memref<64x1xf32, #tpu.memory_space<vmem>>, %arg4: memref<64x64xf32, #tpu.memory_space<vmem>>, %arg5: memref<64x1xf32, #tpu.memory_space<vmem>>, %arg6: memref<64x1xf32, #tpu.memory_space<vmem>>, %arg7: memref<1x1xf32, #tpu.memory_space<vmem>>, %arg8: memref<1x256xf32, #tpu.memory_space<vmem>>) attributes {dimension_semantics = [#tpu.dimension_semantics<parallel>], iteration_bounds = array<i64: 2>, scalar_prefetch = 0 : i64, scratch_operands = 0 : i64, tpu.core_type = #tpu.core_type<tc>, window_params = [{transform_indices = @transform_0, window_bounds = array<i64: 32, 256>}, {pipeline_mode = #tpu.pipeline_mode<synchronous>, transform_indices = @transform_1, window_bounds = array<i64: 64, 32>}, {pipeline_mode = #tpu.pipeline_mode<synchronous>, transform_indices = @transform_2, window_bounds = array<i64: 64, 1>}, {pipeline_mode = #tpu.pipeline_mode<synchronous>, transform_indices = @transform_3, window_bounds = array<i64: 64, 64>}, {pipeline_mode = #tpu.pipeline_mode<synchronous>, transform_indices = @transform_4, window_bounds = array<i64: 64, 1>}, {pipeline_mode = #tpu.pipeline_mode<synchronous>, transform_indices = @transform_5, window_bounds = array<i64: 64, 1>}, {pipeline_mode = #tpu.pipeline_mode<synchronous>, transform_indices = @transform_6, window_bounds = array<i64: 1, 1>}, {transform_indices = @transform_7, window_bounds = array<i64: 1, 256>}]} {
    %c0 = arith.constant 0 : index
    %c0_0 = arith.constant 0 : index
    %0 = vector.load %arg1[%c0, %c0_0] : memref<32x256xf32, #tpu.memory_space<vmem>>, vector<32x256xf32>
    %c0_1 = arith.constant 0 : index
    %c0_2 = arith.constant 0 : index
    %1 = vector.load %arg2[%c0_1, %c0_2] : memref<64x32xf32, #tpu.memory_space<vmem>>, vector<64x32xf32>
    %cst = arith.constant dense<0.000000e+00> : vector<64x256xf32>
    %2 = tpu.matmul %1, %0, %cst {dimension_numbers = #tpu.dot_dimension_numbers<[1], [0], [0], [1], [0, 0, 1, 1], [], []>} : vector<64x32xf32>, vector<32x256xf32>, vector<64x256xf32> -> vector<64x256xf32>
    %c0_3 = arith.constant 0 : index
    %c0_4 = arith.constant 0 : index
    %3 = vector.load %arg3[%c0_3, %c0_4] : memref<64x1xf32, #tpu.memory_space<vmem>>, vector<64x1xf32>
    %4 = vector.broadcast %3 : vector<64x1xf32> to vector<64x256xf32>
    %5 = arith.addf %2, %4 : vector<64x256xf32>
    %6 = math.tanh %5 : vector<64x256xf32>
    %c0_5 = arith.constant 0 : index
    %c0_6 = arith.constant 0 : index
    %7 = vector.load %arg4[%c0_5, %c0_6] : memref<64x64xf32, #tpu.memory_space<vmem>>, vector<64x64xf32>
    %cst_7 = arith.constant dense<0.000000e+00> : vector<64x256xf32>
    %8 = tpu.matmul %7, %6, %cst_7 {dimension_numbers = #tpu.dot_dimension_numbers<[1], [0], [0], [1], [0, 0, 1, 1], [], []>} : vector<64x64xf32>, vector<64x256xf32>, vector<64x256xf32> -> vector<64x256xf32>
    %c0_8 = arith.constant 0 : index
    %c0_9 = arith.constant 0 : index
    %9 = vector.load %arg5[%c0_8, %c0_9] : memref<64x1xf32, #tpu.memory_space<vmem>>, vector<64x1xf32>
    %10 = vector.broadcast %9 : vector<64x1xf32> to vector<64x256xf32>
    %11 = arith.addf %8, %10 : vector<64x256xf32>
    %12 = math.tanh %11 : vector<64x256xf32>
    %c0_10 = arith.constant 0 : index
    %c0_11 = arith.constant 0 : index
    %13 = vector.load %arg6[%c0_10, %c0_11] : memref<64x1xf32, #tpu.memory_space<vmem>>, vector<64x1xf32>
    %14 = vector.broadcast %13 : vector<64x1xf32> to vector<64x256xf32>
    %15 = arith.mulf %12, %14 : vector<64x256xf32>
    %cst_12 = arith.constant dense<0.000000e+00> : vector<256xf32>
    %16 = vector.multi_reduction <add>, %15, %cst_12 [0] : vector<64x256xf32> to vector<256xf32>
    %17 = vector.shape_cast %16 : vector<256xf32> to vector<1x256xf32>
    %c0_13 = arith.constant 0 : index
    %c0_14 = arith.constant 0 : index
    %18 = vector.load %arg7[%c0_13, %c0_14] : memref<1x1xf32, #tpu.memory_space<vmem>>, vector<1x1xf32>
    %19 = vector.broadcast %18 : vector<1x1xf32> to vector<1x256xf32>
    %20 = arith.addf %17, %19 : vector<1x256xf32>
    %c0_15 = arith.constant 0 : index
    %c0_16 = arith.constant 0 : index
    %21 = vector.load %arg8[%c0_15, %c0_16] : memref<1x256xf32, #tpu.memory_space<vmem>>, vector<1x256xf32>
    tpu.vector_store %arg8[%c0_15, %c0_16], %20 {strides = array<i32>} : memref<1x256xf32, #tpu.memory_space<vmem>>, vector<1x256xf32>,
    return
  }
  func.func @transform_0(%arg0: i32) -> (i32, i32) {
    %c0_i32 = arith.constant 0 : i32
    %c0_i32_0 = arith.constant 0 : i32
    return %c0_i32, %arg0 : i32, i32
  }
  func.func @transform_1(%arg0: i32) -> (i32, i32) {
    %c0_i32 = arith.constant 0 : i32
    %c0_i32_0 = arith.constant 0 : i32
    %c0_i32_1 = arith.constant 0 : i32
    return %c0_i32, %c0_i32_0 : i32, i32
  }
  func.func @transform_2(%arg0: i32) -> (i32, i32) {
    %c0_i32 = arith.constant 0 : i32
    %c0_i32_0 = arith.constant 0 : i32
    %c0_i32_1 = arith.constant 0 : i32
    return %c0_i32, %c0_i32_0 : i32, i32
  }
  func.func @transform_3(%arg0: i32) -> (i32, i32) {
    %c0_i32 = arith.constant 0 : i32
    %c0_i32_0 = arith.constant 0 : i32
    %c0_i32_1 = arith.constant 0 : i32
    return %c0_i32, %c0_i32_0 : i32, i32
  }
  func.func @transform_4(%arg0: i32) -> (i32, i32) {
    %c0_i32 = arith.constant 0 : i32
    %c0_i32_0 = arith.constant 0 : i32
    %c0_i32_1 = arith.constant 0 : i32
    return %c0_i32, %c0_i32_0 : i32, i32
  }
  func.func @transform_5(%arg0: i32) -> (i32, i32) {
    %c0_i32 = arith.constant 0 : i32
    %c0_i32_0 = arith.constant 0 : i32
    %c0_i32_1 = arith.constant 0 : i32
    return %c0_i32, %c0_i32_0 : i32, i32
  }
  func.func @transform_6(%arg0: i32) -> (i32, i32) {
    %c0_i32 = arith.constant 0 : i32
    %c0_i32_0 = arith.constant 0 : i32
    %c0_i32_1 = arith.constant 0 : i32
    return %c0_i32, %c0_i32_0 : i32, i32
  }
  func.func @transform_7(%arg0: i32) -> (i32, i32) {
    %c0_i32 = arith.constant 0 : i32
    %c0_i32_0 = arith.constant 0 : i32
    return %c0_i32, %arg0 : i32, i32
  }
}

</mosaic_0001>

<bundles_post_ra>
// kernel: tpu_custom_call.1
= control target key start
LH: loop header
LB: loop body
LE: loop exit
PB: predicated region body
PF: predicated region fallthrough
CT: control target
= control target key end

     0   :  { %s1493_s0 = inlined_call_operand.vmem [shape: f32[32,512], index: 0, kind: input, shape index: {}]   ;;  %s1494_s1 = inlined_call_operand.vmem [shape: f32[64,32], index: 1, kind: input, shape index: {}]   ;;  %s1495_s2 = inlined_call_operand.vmem [shape: f32[64,1], index: 2, kind: input, shape index: {}]   ;;  %s1496_s3 = inlined_call_operand.vmem [shape: f32[64,64], index: 3, kind: input, shape index: {}]   ;;  %s1497_s4 = inlined_call_operand.vmem [shape: f32[64,1], index: 4, kind: input, shape index: {}]   ;;  %s1498_s5 = inlined_call_operand.vmem [shape: f32[64,1], index: 5, kind: input, shape index: {}]   ;;  %s1499_s6 = inlined_call_operand.<no memory space> [shape: f32[1,1], index: 6, kind: input, shape index: {}]   ;;  %s1500_s7 = inlined_call_operand.hbm [shape: f32[1,512], index: 7, kind: output, shape index: {}]  }
   0x1   :  { %v12_v0 = vstv %s1499_s6 }
   0x2   :  { %13 = vst [vmem:[#allocation2] sm:$0x1] %v12_v0 }
   0x3   :  { %14 = vsyncpa [#allocation5], 0 }
   0x4   :  { %16 = vsyncpa [#allocation5 + $0x1], 0  ;;  %s1231_s26 = smov 0   ;;  %s1233_s27 = smov 0  }
   0x5   :  { %s1235_s28 = smov 0   ;;  %s1237_s29 = smov 0  }
   0x6 LB: > { %s947_s6 = sadd.s32 4294967295, %s1182_s29   ;;  %s948_s30 = sadd.s32 4294967294, %s1182_s29   ;;  %s1182_s29 = sphi %s1237_s29, %s1506_s29   ;;  %s1178_s28 = sphi %s1235_s28, %s1505_s28   ;;  %s1174_s27 = sphi %s1233_s27, %s1504_s27   ;;  %s1170_s26 = sphi %s1231_s26, %s1503_s26  }
   0x7   : > { %s1254_s8 = sadd.s32 1, %s1182_s29   ;;  %s29_s9 = sadd.s32 1, %s1178_s28 }
   0x8   : > { %s26_s10 = ssub.s32 %s1182_s29, %s1254_s8  ;;  %p36_p0 = scmp.ne.s32.totalorder %s1178_s28, %s1174_s27 }
   0x9   : > { %p27_p1 = scmp.eq.s32.totalorder %s26_s10, 0  ;;  %p37_p2 = scmp.eq.s32.totalorder %s1182_s29, 0 }
   0xa   : > { %p192_p3 = scmp.eq.s32.totalorder %s947_s6, 1  ;;  %p197_p4 = scmp.ne.s32.totalorder %s1174_s27, %s1170_s26 }
   0xb   : > { %s1267_s11 = scalar_select %p27_p1, %s1178_s28, %s29_s9  }
   0xc   : > { %p38_p5 = por %p37_p2, %p36_p0  ;;  %p1269_p6 = por %p192_p3, %p36_p0 }
   0xd   : > { %p198_p7 = scmp.eq.s32.totalorder %s948_s30, 1  ;;  %p950_p9 = scmp.ge.s32.totalorder %s1182_s29, 2 }
   0xf   : > { %p1273_p8 = por %p198_p7, %p197_p4  ;;  %232 = sbr.rel (%p950_p9) target bundleno = 30 (0x1e), region = 40 }
  0x16   : > { %235 = sbr.rel (!%p38_p5) target bundleno = 30 (0x1e), region = 44  ;;  %s237_s14 = sand.u32 (%p38_p5), 1, %s1178_s28  }
  0x17   : > { %s978_s15 = sshll.u32 (%p38_p5), %s1182_s29, 4  ;;  %s951_s16 = sshll.u32 (%p38_p5), %s237_s14, 6 }
  0x18   : > { %s242_s19 = scalar_lea.vmem (%p38_p5), %s1493_s0, %s978_s15  ;;  %s239_s20 = scalar_lea.vmem (%p38_p5), [#allocation3], %s951_s16 }
  0x19   : > { %v255_v1 = vld [vmem:[%s242_s19] sm:$0xff] (%p38_p5)  ;;  %v257_v2 = vld [vmem:[%s242_s19 + $0x8] sm:$0xff] (%p38_p5) }
  0x1a   : > { %v259_v3 = vld [vmem:[%s242_s19 + $0x20] sm:$0xff] (%p38_p5)  ;;  %256 = vst [vmem:[%s239_s20] sm:$0xff] (%p38_p5), %v255_v1  ;;  %258 = vst [vmem:[%s239_s20 + $0x8] sm:$0xff] (%p38_p5), %v257_v2  ;;  %v261_v4 = vld [vmem:[%s242_s19 + $0x28] sm:$0xff] (%p38_p5) }
  0x1b   : > { %260 = vst [vmem:[%s239_s20 + $0x10] sm:$0xff] (%p38_p5), %v259_v3  ;;  %v263_v5 = vld [vmem:[%s242_s19 + $0x40] sm:$0xff] (%p38_p5)  ;;  %v265_v6 = vld [vmem:[%s242_s19 + $0x48] sm:$0xff] (%p38_p5)  ;;  %262 = vst [vmem:[%s239_s20 + $0x18] sm:$0xff] (%p38_p5), %v261_v4 }
  0x1c   : > { %264 = vst [vmem:[%s239_s20 + $0x20] sm:$0xff] (%p38_p5), %v263_v5  ;;  %266 = vst [vmem:[%s239_s20 + $0x28] sm:$0xff] (%p38_p5), %v265_v6  ;;  %v267_v7 = vld [vmem:[%s242_s19 + $0x60] sm:$0xff] (%p38_p5)  ;;  %v269_v8 = vld [vmem:[%s242_s19 + $0x68] sm:$0xff] (%p38_p5) }
  0x1d   : > { %268 = vst [vmem:[%s239_s20 + $0x30] sm:$0xff] %v267_v7  ;;  %270 = vst [vmem:[%s239_s20 + $0x38] sm:$0xff] %v269_v8 }
  0x1e PF: > { %p954_p10 = scmp.ge.s32.totalorder %s1182_s29, 1  ;;  %p275_p11 = scmp.lt.s32.totalorder %s1182_s29, 3 }
  0x20   : > { %p276_p12 = pnand %p954_p10, %p275_p11 }
  0x21   : > { %s1288_s21 = sand.u32 (!%p276_p12), 1, %s1174_s27   ;;  %v1184_v9 = vmov (!%p276_p12), 0.0   ;;  %v1185_v10 = vmov (!%p276_p12), 0   ;;  %v331_v11 = vld [vmem:[%s1495_s2] sm:$0xff] (!%p276_p12)  ;;  %v332_v23 = vld [vmem:[%s1495_s2 + $0x8] sm:$0xff] (!%p276_p12)  ;;  %v333_v24 = vld [vmem:[%s1495_s2 + $0x10] sm:$0xff] (!%p276_p12) }
  0x22   : > { %279 = sbr.rel (%p276_p12) target bundleno = 595 (0x253), region = 67  ;;  %s955_s22 = sshll.u32 (!%p276_p12), %s1288_s21, 6  ;;  %468 = vmatprep.mubr.f32.mxu0 (!%p276_p12), %v1184_v9  ;;  %684 = vmatprep.mubr.f32.mxu1 (!%p276_p12), %v1184_v9  ;;  %v335_v26 = vld [vmem:[%s1495_s2 + $0x20] sm:$0xff] (!%p276_p12)  ;;  %v334_v27 = vld [vmem:[%s1495_s2 + $0x18] sm:$0xff] (!%p276_p12)  ;;  %vm379_vm0 = vcmask (!%p276_p12), 261120   ;;  %v337_v29 = vld [vmem:[%s1495_s2 + $0x30] sm:$0xff] (!%p276_p12) }
  0x23   : > { %1054 = vset.pattern.permute.xlu0 (!%p276_p12), %v1185_v10  ;;  %1055 = vset.pattern.permute.xlu1 (!%p276_p12), %v1185_v10  ;;  %s284_s25 = scalar_lea.vmem (!%p276_p12), [#allocation3], %s955_s22  ;;  %v323_v28 = vld [vmem:[%s1494_s1] sm:$0xff] (!%p276_p12)  ;;  %v336_v30 = vld [vmem:[%s1495_s2 + $0x28] sm:$0xff] (!%p276_p12)  ;;  %v338_v33 = vld [vmem:[%s1495_s2 + $0x38] sm:$0xff] (!%p276_p12)  ;;  %vm589_vm1 = vcmask (!%p276_p12), 523264   ;;  %s956_s19 = sshll.u32 (!%p276_p12), %s1288_s21, 1 }
  0x24   : > { %v316_v12 = vld [vmem:[%s284_s25 + $0x8] sm:$0xff] (!%p276_p12)  ;;  %v318_v13 = vld [vmem:[%s284_s25 + $0x18] sm:$0xff] (!%p276_p12)  ;;  %v315_v14 = vld [vmem:[%s284_s25] sm:$0xff] (!%p276_p12)  ;;  %341 = vperm.xlu0 (!%p276_p12), %1054, %v331_v11   ;;  %351 = vperm.xlu1 (!%p276_p12), %1055, %v333_v24   ;;  %s979_s20 = sshll.u32 (!%p276_p12), %s947_s6, 5  ;;  %s312_s22 = scalar_lea.vmem (!%p276_p12), [#allocation4], %s956_s19 }
  0x25   : > { %v980_v15 = vpack.c.bf16 (!%p276_p12), %v318_v13, %v316_v12  ;;  %v317_v16 = vld [vmem:[%s284_s25 + $0x10] sm:$0xff] (!%p276_p12)  ;;  %v320_v17 = vld [vmem:[%s284_s25 + $0x28] sm:$0xff] (!%p276_p12)  ;;  %v322_v18 = vld [vmem:[%s284_s25 + $0x38] sm:$0xff] (!%p276_p12)  ;;  %s883_s23 = sshll.u32 (!%p276_p12), %s312_s22, 4  ;;  %s1449_s30 = scalar_lea.hbm (!%p276_p12), %s1500_s7, %s979_s20  ;;  %s1451_s23 = int_to_ptr.vmem [resolvable:$true] %s883_s23 }
  0x26   : > { %v982_v19 = vpack.c.bf16 (!%p276_p12), %v317_v16, %v315_v14  ;;  %v984_v20 = vpack.c.bf16 (!%p276_p12), %v322_v18, %v320_v17  ;;  %v319_v21 = vld [vmem:[%s284_s25 + $0x20] sm:$0xff] (!%p276_p12)  ;;  %v321_v22 = vld [vmem:[%s284_s25 + $0x30] sm:$0xff] (!%p276_p12)  ;;  %v833_v54 = vld [vmem:[#allocation2] sm:$0x1] (!%p276_p12)  ;;  %s869_s9 = scalar_lea.sflag (!%p276_p12), [#allocation5], %s1288_s21  ;;  %s1120_s10 = scalar_lea.vmem (!%p276_p12), %s1451_s23, 32 }
  0x27   : > { %981 = vmatprep.subr.bf16.mxu0 (!%p276_p12), %v980_v15  ;;  %v986_v25 = vpack.c.bf16 (!%p276_p12), %v321_v22, %v319_v21  ;;  %v324_v31 = vld [vmem:[%s1494_s1 + $0x8] sm:$0xff] (!%p276_p12)  ;;  %v541_v32 = vld [vmem:[%s1497_s4] sm:$0xff] (!%p276_p12)  ;;  %v325_v34 = vld [vmem:[%s1494_s1 + $0x10] sm:$0xff] (!%p276_p12)  ;;  %p1121_p13 = scmp.ne.s32.totalorder (!%p276_p12), %s1451_s23, %s1120_s10  ;;  %s1187_s6 = smov (!%p276_p12), [#allocation4]  }
  0x28   : > { %983 = vmatpush1.bf16.msra.mxu0 (!%p276_p12), %v982_v19  ;;  %346 = vperm.xlu0 (!%p276_p12), %1054, %v332_v23   ;;  %v543_v35 = vld [vmem:[%s1497_s4 + $0x10] sm:$0xff] (!%p276_p12)  ;;  %v542_v36 = vld [vmem:[%s1497_s4 + $0x8] sm:$0xff] (!%p276_p12)  ;;  %v326_v37 = vld [vmem:[%s1494_s1 + $0x18] sm:$0xff] (!%p276_p12)  ;;  %s1124_s14 = sshll.u32 (!%p276_p12), %s1187_s6, 4  ;;  %s1125_s14 = int_to_ptr.vmem [resolvable:$false] %s1124_s14 }
  0x29   : > { %985 = vmatprep.subr.bf16.mxu0 %v984_v20  ;;  %356 = vperm.xlu1 %1055, %v334_v27   ;;  %v545_v38 = vld [vmem:[%s1497_s4 + $0x20] sm:$0xff]  ;;  %v544_v39 = vld [vmem:[%s1497_s4 + $0x18] sm:$0xff]  ;;  %v547_v41 = vld [vmem:[%s1497_s4 + $0x30] sm:$0xff]  ;;  %p1122_p0 = pnand %p1121_p13, %p1269_p6  ;;  %s1126_s15 = scalar_lea.vmem %s1125_s14, 64 }
  0x2a   : > { %v327_v40 = vld [vmem:[%s1494_s1 + $0x20] sm:$0xff]  ;;  %v546_v42 = vld [vmem:[%s1497_s4 + $0x28] sm:$0xff]  ;;  %v548_v45 = vld [vmem:[%s1497_s4 + $0x38] sm:$0xff]  ;;  %p1127_p2 = scmp.lt.s32.totalorder %s1451_s23, %s1125_s14  ;;  %p1128_p3 = scmp.lt.s32.totalorder %s1126_s15, %s1120_s10 }
  0x2b   : > { %v328_v43 = vld [vmem:[%s1494_s1 + $0x28] sm:$0xff]  ;;  %v743_v44 = vld [vmem:[%s1498_s5] sm:$0xff]  ;;  %v329_v46 = vld [vmem:[%s1494_s1 + $0x30] sm:$0xff]  ;;  %p1123_p1 = pneg %p1122_p0 }
  0x2c   : > { %987 = vmatpush1.bf16.msra.mxu0 %v986_v25  ;;  %361 = vperm.xlu0 %1054, %v335_v26   ;;  %v745_v47 = vld [vmem:[%s1498_s5 + $0x10] sm:$0xff]  ;;  %v744_v48 = vld [vmem:[%s1498_s5 + $0x8] sm:$0xff]  ;;  %v330_v49 = vld [vmem:[%s1494_s1 + $0x38] sm:$0xff]  ;;  %p1129_p4 = por %p1128_p3, %p1127_p2 }
  0x2d   : > { %366 = vperm.xlu1 %1055, %v336_v30   ;;  %v747_v50 = vld [vmem:[%s1498_s5 + $0x20] sm:$0xff]  ;;  %v746_v51 = vld [vmem:[%s1498_s5 + $0x18] sm:$0xff]  ;;  %v749_v52 = vld [vmem:[%s1498_s5 + $0x30] sm:$0xff] }
  0x2e   : > { %v748_v53 = vld [vmem:[%s1498_s5 + $0x28] sm:$0xff]  ;;  %v750_v55 = vld [vmem:[%s1498_s5 + $0x38] sm:$0xff]  ;;  %p1130_p5 = pnand %p1129_p4, %p1123_p1 }
  0x2f   : > { %957 = vmatmul.mubr.msk.f32.vlgmr.msra.gmra.mrb[0].mxu0 %vm379_vm0, %v323_v28 }
  0x30   : > { %474 = vmatprep.mubr.f32.mxu0 %v1184_v9  ;;  %371 = vperm.xlu0 %1054, %v337_v29  }
  0x31   : > { %376 = vperm.xlu1 %1055, %v338_v33  }
  0x33   : > { %958 = vmatmul.mubr.msk.f32.gmra.mrb[2].mxu0 %vm379_vm0, %v324_v31 }
  0x34   : > { %480 = vmatprep.mubr.f32.mxu0 %v1184_v9  ;;  %551 = vperm.xlu0 %1054, %v541_v32  }
  0x35   : > { %556 = vperm.xlu1 %1055, %v542_v36  }
  0x37   : > { %959 = vmatmul.mubr.msk.f32.gmra.mrb[4].mxu0 %vm379_vm0, %v325_v34 }
  0x38   : > { %486 = vmatprep.mubr.f32.mxu0 %v1184_v9  ;;  %561 = vperm.xlu0 %1054, %v543_v35  }
  0x39   : > { %566 = vperm.xlu1 %1055, %v544_v39  }
  0x3b   : > { %960 = vmatmul.mubr.msk.f32.gmra.mrb[6].mxu0 %vm379_vm0, %v326_v37 }
  0x3c   : > { %492 = vmatprep.mubr.f32.mxu0 %v1184_v9  ;;  %571 = vperm.xlu0 %1054, %v545_v38  }
  0x3d   : > { %576 = vperm.xlu1 %1055, %v546_v42  }
  0x3f   : > { %961 = vmatmul.mubr.msk.f32.gmra.mrb[8].mxu0 %vm379_vm0, %v327_v40 }
  0x40   : > { %498 = vmatprep.mubr.f32.mxu0 %v1184_v9  ;;  %581 = vperm.xlu0 %1054, %v547_v41  }
  0x41   : > { %586 = vperm.xlu1 %1055, %v548_v45  }
  0x43   : > { %962 = vmatmul.mubr.msk.f32.gmra.mrb[10].mxu0 %vm379_vm0, %v328_v43 }
  0x44   : > { %504 = vmatprep.mubr.f32.mxu0 %v1184_v9  ;;  %753 = vperm.xlu0 %1054, %v743_v44  }
  0x45   : > { %758 = vperm.xlu1 %1055, %v744_v48  }
  0x47   : > { %963 = vmatmul.mubr.msk.f32.gmra.mrb[12].mxu0 %vm379_vm0, %v329_v46 }
  0x48   : > { %510 = vmatprep.mubr.f32.mxu0 %v1184_v9  ;;  %763 = vperm.xlu0 %1054, %v745_v47  }
  0x49   : > { %768 = vperm.xlu1 %1055, %v746_v51  }
  0x4b   : > { %964 = vmatmul.mubr.msk.f32.gmra.mrb[14].mxu0 %vm379_vm0, %v330_v49 }
  0x4c   : > { %773 = vperm.xlu0 %1054, %v747_v50   ;;  %678 = vmatprep.mubr.f32.mxu0 %v1184_v9 }
  0x4d   : > { %778 = vperm.xlu1 %1055, %v748_v53  }
  0x50   : > { %783 = vperm.xlu0 %1054, %v749_v52  }
  0x51   : > { %788 = vperm.xlu1 %1055, %v750_v55  }
  0x54   : > { %836 = vperm.xlu0 %1054, %v833_v54  }
  0xa3   : > { %v342_v56 = vpop.permute.xlu0 %341  ;;  %v352_v1 = vpop.permute.xlu1 %351 }
  0xa7   : > { %v347_v61 = vpop.permute.xlu0 %346 }
  0xa8   : > { %v357_v7 = vpop.permute.xlu1 %356 }
  0xab   : > { %v362_v15 = vpop.permute.xlu0 %361 }
  0xac   : > { %v367_v24 = vpop.permute.xlu1 %366 }
  0xaf   : > { %v372_v31 = vpop.permute.xlu0 %371 }
  0xb0   : > { %v377_v40 = vpop.permute.xlu1 %376 }
 0x102   : > { %v470_v57 = vpop.f32.mrb[0].mxu0 }
 0x103   : > { %v471_v58 = vadd.f32 %v470_v57, %v342_v56  ;;  %v472_v59 = vpop.f32.mrb[1].mxu0  ;;  %v533_v57 = vld [vmem:[%s1496_s3] sm:$0xff] }
 0x104   : > { %v473_v60 = vadd.f32 %v472_v59, %v342_v56  ;;  %v535_v59 = vld [vmem:[%s1496_s3 + $0x10] sm:$0xff] }
 0x105   : > { %1056 = vtanh.f32 %v471_v58  ;;  %v534_v58 = vld [vmem:[%s1496_s3 + $0x8] sm:$0xff] }
 0x106   : > { %v476_v62 = vpop.f32.mrb[2].mxu0  ;;  %1058 = vtanh.f32 %v473_v60  ;;  %v536_v60 = vld [vmem:[%s1496_s3 + $0x18] sm:$0xff] }
 0x107   : > { %v477_v63 = vadd.f32 %v476_v62, %v347_v61  ;;  %v478_v0 = vpop.f32.mrb[3].mxu0  ;;  %v538_v62 = vld [vmem:[%s1496_s3 + $0x28] sm:$0xff] }
 0x108   : > { %v479_v2 = vadd.f32 %v478_v0, %v347_v61  ;;  %v537_v61 = vld [vmem:[%s1496_s3 + $0x20] sm:$0xff]  ;;  %v540_v0 = vld [vmem:[%s1496_s3 + $0x38] sm:$0xff] }
 0x109   : > { %1060 = vtanh.f32 %v477_v63  ;;  %v539_v63 = vld [vmem:[%s1496_s3 + $0x30] sm:$0xff] }
 0x10a   : > { %1062 = vtanh.f32 %v479_v2  ;;  %v482_v3 = vpop.f32.mrb[4].mxu0  ;;  %v557_v2 = vpop.permute.xlu1 %556 }
 0x10b   : > { %v483_v4 = vadd.f32 %v482_v3, %v352_v1  ;;  %v484_v5 = vpop.f32.mrb[5].mxu0 }
 0x10c   : > { %v485_v6 = vadd.f32 %v484_v5, %v352_v1  ;;  %v552_v1 = vpop.permute.xlu0 %551 }
 0x10d   : > { %1064 = vtanh.f32 %v483_v4 }
 0x10e   : > { %v488_v8 = vpop.f32.mrb[6].mxu0  ;;  %1066 = vtanh.f32 %v485_v6  ;;  %v567_v4 = vpop.permute.xlu1 %566 }
 0x10f   : > { %v489_v10 = vadd.f32 %v488_v8, %v357_v7  ;;  %v490_v11 = vpop.f32.mrb[7].mxu0  ;;  %v1057_v13 = vpop.eup %1056 }
 0x110   : > { %v491_v12 = vadd.f32 %v490_v11, %v357_v7  ;;  %v1059_v14 = vpop.eup %1058  ;;  %v562_v3 = vpop.permute.xlu0 %561 }
 0x111   : > { %1068 = vtanh.f32 %v489_v10 }
 0x112   : > { %1070 = vtanh.f32 %v491_v12  ;;  %v494_v16 = vpop.f32.mrb[8].mxu0 }
 0x113   : > { %v1061_v17 = vpop.eup %1060  ;;  %v495_v18 = vadd.f32 %v494_v16, %v362_v15  ;;  %v496_v19 = vpop.f32.mrb[9].mxu0 }
 0x114   : > { %v1063_v20 = vpop.eup %1062  ;;  %v497_v21 = vadd.f32 %v496_v19, %v362_v15  ;;  %v990_v22 = vpack.c.bf16 %v1061_v17, %v1057_v13  ;;  %v572_v5 = vpop.permute.xlu0 %571 }
 0x115   : > { %v988_v23 = vpack.c.bf16 %v1063_v20, %v1059_v14  ;;  %1072 = vtanh.f32 %v495_v18  ;;  %v577_v13 = vpop.permute.xlu1 %576 }
 0x116   : > { %v500_v25 = vpop.f32.mrb[10].mxu0  ;;  %1074 = vtanh.f32 %v497_v21 }
 0x117   : > { %v501_v26 = vadd.f32 %v500_v25, %v367_v24  ;;  %v502_v27 = vpop.f32.mrb[11].mxu0  ;;  %989 = vmatprep.subr.bf16.mxu0 %v988_v23  ;;  %1004 = vmatprep.subr.bf16.mxu1 %v988_v23  ;;  %v1065_v29 = vpop.eup %1064 }
 0x118   : > { %v503_v28 = vadd.f32 %v502_v27, %v367_v24  ;;  %991 = vmatpush1.bf16.msra.mxu0 %v990_v22  ;;  %1008 = vmatpush1.bf16.msra.mxu1 %v990_v22  ;;  %v1067_v30 = vpop.eup %1066  ;;  %v582_v16 = vpop.permute.xlu0 %581 }
 0x119   : > { %1076 = vtanh.f32 %v501_v26  ;;  %v587_v20 = vpop.permute.xlu1 %586 }
 0x11a   : > { %1078 = vtanh.f32 %v503_v28  ;;  %v506_v32 = vpop.f32.mrb[12].mxu0 }
 0x11b   : > { %v1069_v33 = vpop.eup %1068  ;;  %v507_v34 = vadd.f32 %v506_v32, %v372_v31  ;;  %v508_v35 = vpop.f32.mrb[13].mxu0 }
 0x11c   : > { %v1071_v36 = vpop.eup %1070  ;;  %v509_v37 = vadd.f32 %v508_v35, %v372_v31  ;;  %v994_v38 = vpack.c.bf16 %v1069_v33, %v1065_v29  ;;  %v754_v25 = vpop.permute.xlu0 %753 }
 0x11d   : > { %v992_v39 = vpack.c.bf16 %v1071_v36, %v1067_v30  ;;  %1080 = vtanh.f32 %v507_v34  ;;  %v759_v31 = vpop.permute.xlu1 %758 }
 0x11e   : > { %v512_v41 = vpop.f32.mrb[14].mxu0  ;;  %1082 = vtanh.f32 %v509_v37 }
 0x11f   : > { %v513_v42 = vadd.f32 %v512_v41, %v377_v40  ;;  %v514_v43 = vpop.f32.mrb[15].mxu0  ;;  %993 = vmatprep.subr.bf16.mxu0 %v992_v39  ;;  %1005 = vmatprep.subr.bf16.mxu1 %v992_v39  ;;  %v1073_v45 = vpop.eup %1072 }
 0x120   : > { %v515_v44 = vadd.f32 %v514_v43, %v377_v40  ;;  %995 = vmatpush1.bf16.msra.mxu0 %v994_v38  ;;  %1009 = vmatpush1.bf16.msra.mxu1 %v994_v38  ;;  %v1075_v46 = vpop.eup %1074  ;;  %v764_v40 = vpop.permute.xlu0 %763 }
 0x121   : > { %1084 = vtanh.f32 %v513_v42 }
 0x122   : > { %1086 = vtanh.f32 %v515_v44 }
 0x123   : > { %v1077_v47 = vpop.eup %1076 }
 0x124   : > { %v1079_v48 = vpop.eup %1078  ;;  %v998_v49 = vpack.c.bf16 %v1077_v47, %v1073_v45 }
 0x125   : > { %v996_v50 = vpack.c.bf16 %v1079_v48, %v1075_v46 }
 0x127   : > { %997 = vmatprep.subr.bf16.mxu0 %v996_v50  ;;  %1006 = vmatprep.subr.bf16.mxu1 %v996_v50  ;;  %v1081_v51 = vpop.eup %1080 }
 0x128   : > { %999 = vmatpush1.bf16.msra.mxu0 %v998_v49  ;;  %1010 = vmatpush1.bf16.msra.mxu1 %v998_v49  ;;  %v1083_v52 = vpop.eup %1082 }
 0x12b   : > { %v1085_v53 = vpop.eup %1084 }
 0x12c   : > { %v1087_v54 = vpop.eup %1086  ;;  %v1002_v55 = vpack.c.bf16 %v1085_v53, %v1081_v51  ;;  %v769_v53 = vpop.permute.xlu1 %768 }
 0x12d   : > { %v1000_v56 = vpack.c.bf16 %v1087_v54, %v1083_v52 }
 0x12f   : > { %1001 = vmatprep.subr.bf16.mxu0 %v1000_v56  ;;  %1007 = vmatprep.subr.bf16.mxu1 %v1000_v56 }
 0x130   : > { %1003 = vmatpush1.bf16.msra.mxu0 %v1002_v55  ;;  %1011 = vmatpush1.bf16.msra.mxu1 %v1002_v55 }
 0x133   : > { %965 = vmatmul.mubr.msk.f32.vlgmr.msra.gmra.mrb[16].mxu0 %vm589_vm1, %v533_v57  ;;  %966 = vmatmul.mubr.msk.f32.vlgmr.msra.gmra.mrb[0].mxu1 %vm589_vm1, %v534_v58 }
 0x134   : > { %690 = vmatprep.mubr.f32.mxu1 %v1184_v9 }
 0x137   : > { %967 = vmatmul.mubr.msk.f32.gmra.mrb[2].mxu1 %vm589_vm1, %v535_v59 }
 0x138   : > { %696 = vmatprep.mubr.f32.mxu1 %v1184_v9 }
 0x13b   : > { %968 = vmatmul.mubr.msk.f32.gmra.mrb[4].mxu1 %vm589_vm1, %v536_v60 }
 0x13c   : > { %702 = vmatprep.mubr.f32.mxu1 %v1184_v9 }
 0x13f   : > { %969 = vmatmul.mubr.msk.f32.gmra.mrb[6].mxu1 %vm589_vm1, %v537_v61 }
 0x140   : > { %708 = vmatprep.mubr.f32.mxu1 %v1184_v9 }
 0x143   : > { %970 = vmatmul.mubr.msk.f32.gmra.mrb[8].mxu1 %vm589_vm1, %v538_v62 }
 0x144   : > { %714 = vmatprep.mubr.f32.mxu1 %v1184_v9 }
 0x147   : > { %971 = vmatmul.mubr.msk.f32.gmra.mrb[10].mxu1 %vm589_vm1, %v539_v63 }
 0x148   : > { %720 = vmatprep.mubr.f32.mxu1 %v1184_v9 }
 0x14b   : > { %972 = vmatmul.mubr.msk.f32.gmra.mrb[12].mxu1 %vm589_vm1, %v540_v0  ;;  %v774_v0 = vpop.permute.xlu0 %773 }
 0x206   : > { %v680_v6 = vpop.f32.mrb[16].mxu0  ;;  %v686_v7 = vpop.f32.mrb[0].mxu1 }
 0x207   : > { %v681_v8 = vadd.f32 %v680_v6, %v552_v1  ;;  %v687_v10 = vadd.f32 %v686_v7, %v557_v2  ;;  %v682_v11 = vpop.f32.mrb[17].mxu0  ;;  %v688_v12 = vpop.f32.mrb[1].mxu1 }
 0x208   : > { %v683_v14 = vadd.f32 %v682_v11, %v552_v1  ;;  %v689_v9 = vadd.f32 %v688_v12, %v557_v2  ;;  %v779_v11 = vpop.permute.xlu1 %778 }
 0x209   : > { %1088 = vtanh.f32 %v681_v8 }
 0x20a   : > { %1090 = vtanh.f32 %v687_v10  ;;  %v692_v15 = vpop.f32.mrb[2].mxu1 }
 0x20b   : > { %1092 = vtanh.f32 %v683_v14  ;;  %v693_v17 = vadd.f32 %v692_v15, %v562_v3  ;;  %v694_v18 = vpop.f32.mrb[3].mxu1 }
 0x20c   : > { %1094 = vtanh.f32 %v689_v9  ;;  %v695_v19 = vadd.f32 %v694_v18, %v562_v3 }
 0x20d   : > { %1096 = vtanh.f32 %v693_v17  ;;  %v784_v17 = vpop.permute.xlu0 %783 }
 0x20e   : > { %1098 = vtanh.f32 %v695_v19  ;;  %v698_v21 = vpop.f32.mrb[4].mxu1 }
 0x20f   : > { %v699_v22 = vadd.f32 %v698_v21, %v567_v4  ;;  %v700_v23 = vpop.f32.mrb[5].mxu1 }
 0x210   : > { %v701_v24 = vadd.f32 %v700_v23, %v567_v4 }
 0x211   : > { %1100 = vtanh.f32 %v699_v22 }
 0x212   : > { %1102 = vtanh.f32 %v701_v24  ;;  %v704_v26 = vpop.f32.mrb[6].mxu1 }
 0x213   : > { %v1089_v27 = vpop.eup %1088  ;;  %v705_v28 = vadd.f32 %v704_v26, %v572_v5  ;;  %v706_v29 = vpop.f32.mrb[7].mxu1 }
 0x214   : > { %v1091_v30 = vpop.eup %1090  ;;  %v791_v32 = vmul.f32 %v1089_v27, %v754_v25  ;;  %v707_v33 = vadd.f32 %v706_v29, %v572_v5  ;;  %v839_v29 = vlaneseq }
 0x215   : > { %v1093_v34 = vpop.eup %1092  ;;  %v793_v35 = vmul.f32 %v1091_v30, %v759_v31  ;;  %1104 = vtanh.f32 %v705_v28 }
 0x216   : > { %v1095_v36 = vpop.eup %1094  ;;  %v792_v37 = vmul.f32 %v1093_v34, %v754_v25  ;;  %1106 = vtanh.f32 %v707_v33  ;;  %v710_v38 = vpop.f32.mrb[8].mxu1  ;;  %v840_v34 = vshrl.u32 %v839_v29, 7  ;;  %vm865_vm2 = vcmp.lt.s32.totalorder %v839_v29, 256 }
 0x217   : > { %v1097_v39 = vpop.eup %1096  ;;  %v807_v41 = vadd.f32 %v793_v35, %v791_v32  ;;  %v794_v42 = vmul.f32 %v1095_v36, %v759_v31  ;;  %v711_v43 = vadd.f32 %v710_v38, %v577_v13  ;;  %v712_v44 = vpop.f32.mrb[9].mxu1  ;;  %v1186_v38 = vmov 1966171168  }
 0x218   : > { %v1099_v45 = vpop.eup %1098  ;;  %v795_v46 = vmul.f32 %v1097_v39, %v764_v40  ;;  %v713_v47 = vadd.f32 %v712_v44, %v577_v13  ;;  %v849_v39 = vunpack.c.l.s4 %v1186_v38 }
 0x219   : > { %v820_v48 = vadd.f32 %v794_v42, %v792_v37  ;;  %v796_v49 = vmul.f32 %v1099_v45, %v764_v40  ;;  %1108 = vtanh.f32 %v711_v43  ;;  %v837_v43 = vpop.permute.xlu0 %836 }
 0x21a   : > { %v808_v50 = vadd.f32 %v807_v41, %v795_v46  ;;  %1110 = vtanh.f32 %v713_v47  ;;  %v716_v51 = vpop.f32.mrb[10].mxu1  ;;  %v841_v41 = vsub.s32 0, %v840_v34  ;;  %v850_v46 = vunpack.c.0.s8 %v849_v39 }
 0x21b   : > { %v1101_v52 = vpop.eup %1100  ;;  %v821_v54 = vadd.f32 %v820_v48, %v796_v49  ;;  %v717_v55 = vadd.f32 %v716_v51, %v582_v16  ;;  %v718_v56 = vpop.f32.mrb[11].mxu1 }
 0x21c   : > { %v1103_v57 = vpop.eup %1102  ;;  %v797_v58 = vmul.f32 %v1101_v52, %v769_v53  ;;  %v719_v59 = vadd.f32 %v718_v56, %v582_v16  ;;  %v842_v48 = vrot.slane %v837_v43, %v841_v41  ;;  %v853_v52 = vsub.s32 %v850_v46, %v840_v34 }
 0x21d   : > { %v798_v60 = vmul.f32 %v1103_v57, %v769_v53  ;;  %1112 = vtanh.f32 %v717_v55 }
 0x21e   : > { %v809_v61 = vadd.f32 %v808_v50, %v797_v58  ;;  %1114 = vtanh.f32 %v719_v59  ;;  %v722_v62 = vpop.f32.mrb[12].mxu1 }
 0x21f   : > { %v1105_v63 = vpop.eup %1104  ;;  %v822_v1 = vadd.f32 %v821_v54, %v798_v60  ;;  %v723_v2 = vadd.f32 %v722_v62, %v587_v20  ;;  %v724_v3 = vpop.f32.mrb[13].mxu1 }
 0x220   : > { %v1107_v4 = vpop.eup %1106  ;;  %v799_v5 = vmul.f32 %v1105_v63, %v774_v0  ;;  %v725_v6 = vadd.f32 %v724_v3, %v587_v20  ;;  %v789_v20 = vpop.permute.xlu1 %788 }
 0x221   : > { %v800_v7 = vmul.f32 %v1107_v4, %v774_v0  ;;  %1116 = vtanh.f32 %v723_v2 }
 0x222   : > { %v810_v8 = vadd.f32 %v809_v61, %v799_v5  ;;  %1118 = vtanh.f32 %v725_v6 }
 0x223   : > { %v1109_v10 = vpop.eup %1108  ;;  %v823_v12 = vadd.f32 %v822_v1, %v800_v7 }
 0x224   : > { %v1111_v13 = vpop.eup %1110  ;;  %v801_v14 = vmul.f32 %v1109_v10, %v779_v11 }
 0x225   : > { %v802_v9 = vmul.f32 %v1111_v13, %v779_v11 }
 0x226   : > { %v811_v15 = vadd.f32 %v810_v8, %v801_v14 }
 0x227   : > { %v1113_v16 = vpop.eup %1112  ;;  %v824_v18 = vadd.f32 %v823_v12, %v802_v9 }
 0x228   : > { %v1115_v19 = vpop.eup %1114  ;;  %v803_v21 = vmul.f32 %v1113_v16, %v784_v17 }
 0x229   : > { %v804_v22 = vmul.f32 %v1115_v19, %v784_v17 }
 0x22a   : > { %v812_v23 = vadd.f32 %v811_v15, %v803_v21 }
 0x22b   : > { %v1117_v24 = vpop.eup %1116  ;;  %v825_v25 = vadd.f32 %v824_v18, %v804_v22 }
 0x22c   : > { %v1119_v26 = vpop.eup %1118  ;;  %v805_v27 = vmul.f32 %v1117_v24, %v789_v20 }
 0x22d   : > { %v806_v28 = vmul.f32 %v1119_v26, %v789_v20 }
 0x22e   : > { %v813_v30 = vadd.f32 %v812_v23, %v805_v27 }
 0x22f   : > { %v826_v31 = vadd.f32 %v825_v25, %v806_v28 }
 0x230   : > { %v814_v32 = vrot.slane %v813_v30, 4 }
 0x231   : > { %v827_v33 = vrot.slane %v826_v31, 4 }
 0x232   : > { %v815_v35 = vadd.f32 %v814_v32, %v813_v30 }
 0x233   : > { %v828_v36 = vadd.f32 %v827_v33, %v826_v31 }
 0x234   : > { %v816_v37 = vrot.slane %v815_v35, 2 }
 0x235   : > { %v829_v40 = vrot.slane %v828_v36, 2 }
 0x236   : > { %v817_v42 = vadd.f32 %v816_v37, %v815_v35 }
 0x237   : > { %v830_v44 = vadd.f32 %v829_v40, %v828_v36 }
 0x238   : > { %v818_v45 = vrot.slane %v817_v42, 1 }
 0x239   : > { %v831_v47 = vrot.slane %v830_v44, 1 }
 0x23a   : > { %v819_v49 = vadd.f32 %v818_v45, %v817_v42 }
 0x23b   : > { %v832_v50 = vadd.f32 %v831_v47, %v830_v44 }
 0x23c   : > { %v843_v51 = vadd.f32 %v842_v48, %v819_v49 }
 0x23d   : > { %v844_v53 = vadd.f32 %v842_v48, %v832_v50 }
 0x23f   : > { %v847_v54 = vcombine.low %v843_v51, %v844_v53 }
 0x241   : > { %v854_v55 = vrot.slane %v847_v54, %v853_v52 }
 0x243   : > { %v861_v56 = vrot.slane %v854_v55, %v853_v52 }
 0x245   : > { %867 = vst.msk [vmem:[%s312_s22] sm:$0x3] %vm865_vm2, %v861_v56 }
 0x246   : > { %1133 = shalt.err (!%p1130_p5)
}
 0x247   : > { %s1134_s21 = scalar_lea.hbm %s1449_s30, 32  ;;  %s1138_s18 = scalar_lea.hbm %s1500_s7, 64 }
 0x248   : > { %p1135_p7 = scmp.ne.s32.totalorder %s1449_s30, %s1134_s21  ;;  %p1139_p12 = scmp.lt.u32.totalorder %s1449_s30, %s1500_s7 }
 0x249   : > { %p1140_p13 = scmp.lt.u32.totalorder %s1138_s18, %s1134_s21  ;;  %p1142_p1 = scmp.lt.u32.totalorder %s1134_s21, %s1449_s30 }
 0x24a   : > { %p1136_p10 = pnand %p1135_p7, %p1269_p6 }
 0x24b   : > { %p1141_p0 = por %p1140_p13, %p1139_p12 }
 0x24c   : > { %p1137_p11 = pneg %p1136_p10 }
 0x24d   : > { %p1143_p2 = por %p1142_p1, %p1141_p0 }
 0x24f   : > { %p1144_p3 = pnand %p1143_p2, %p1137_p11 }
 0x251   : > { %1147 = shalt.err (!%p1144_p3)
}
 0x252   : > { %1012 = dma.vmem_to_hbm [thread:$0]  (%p1269_p6), %s1451_s23, 32, %s1449_s30, %s869_s9  }
 0x253 PF: > { %s895_s22 = sand.u32 1, %s1170_s26   ;;  %p1015_p4 = pnand %p950_p9, %p1273_p8 }
 0x254   : > { %s896_s24 = scalar_lea.sflag [#allocation5], %s895_s22 }
 0x255   : > { %1165 = dma.done.wait (!%p1015_p4), %s896_s24, 32  }
 0x256   : > { %1167 = vsyncadd (!%p1015_p4), %s896_s24, 4294967264  ;;  %p19_p5 = scmp.ge.s32.totalorder %s1254_s8, 4   ;;  %s1503_s26 = smov %s1174_s27 }
 0x257   : > { %s1504_s27 = smov %s1178_s28  ;;  %s1505_s28 = smov %s1267_s11 }
 0x258   : > { %s1506_s29 = smov %s1254_s8  ;;  %21 = sbr.rel (!%p19_p5) target bundleno = 6 (0x6), region = 111 }
 0x25f   :  { %901 = vsyncpa [#allocation5], 1 }
 0x260   :  { %903 = vsyncpa [#allocation5 + $0x1], 1 }

</bundles_post_ra>
